<compile_context>
chip_gen: v7x
topology: tpu7x:2x2x1
jax: 0.10.0
libtpu: 0.0.40
codegen_flags: <defaults>
</compile_context>

<pallas_src>
import jax
import jax.numpy as jnp
import numpy as np
from jax.experimental import pallas as pl
from jax.experimental.pallas import tpu as pltpu


def _round_up(x, m):
    return ((x + m - 1) // m) * m


# ---------------------------------------------------------------------------
# Per-generation configuration
# ---------------------------------------------------------------------------
def _device_config():
    """Tiling / VMEM knobs per TPU generation."""
    kind = ""
    try:
        kind = jax.devices()[0].device_kind.lower()
    except Exception:
        pass
    if "v7" in kind:
        # 64 MiB VMEM per TC, 2 TCs per chip -> smaller tiles, keep >= 2 row steps.
        return dict(row_tile=256, vmem_limit=48 * 1024 * 1024,
                    vmem_budget=40 * 1024 * 1024, min_row_steps=2, lane=256)
    if "v6" in kind:
        # 128 MiB VMEM, 2x256x256 MXU -> prefer 256-multiple feature padding.
        return dict(row_tile=512, vmem_limit=100 * 1024 * 1024,
                    vmem_budget=88 * 1024 * 1024, min_row_steps=1, lane=256)
    # v5e / unknown: 128 MiB VMEM, 4x128x128 MXU -> 128-lane padding is optimal.
    return dict(row_tile=512, vmem_limit=100 * 1024 * 1024,
                vmem_budget=88 * 1024 * 1024, min_row_steps=1, lane=128)


def _lane_pad(dim, lane):
    # Never blow a <=128 feature dim up to 256; otherwise pad to the MXU-friendly
    # multiple for this generation.
    if dim <= 128:
        return 128
    return _round_up(dim, lane)


def _single_buffered_spec(shape, index_map):
    """BlockSpec whose block never changes across the grid -> single VMEM buffer."""
    if hasattr(pl, "Buffered"):
        try:
            return pl.BlockSpec(shape, index_map, pipeline_mode=pl.Buffered(1))
        except TypeError:
            pass
    return pl.BlockSpec(shape, index_map)


def _choose_row_tile(N, cap, min_steps):
    n8 = _round_up(N, 8)
    tm = max(8, _round_up(min(cap, n8), 8))
    # v7x: ensure the row grid has >= 2 steps so both TensorCores get work.
    while min_steps > 1 and pl.cdiv(n8, tm) < min_steps and tm > 8:
        tm = max(8, _round_up(tm // 2, 8))
    # Shrink tm if zero-row padding waste exceeds ~12.5% of N (padded rows still
    # cost full DMA + MXU work).
    while tm > 8 and (_round_up(N, tm) - N) * 8 > max(N, 8):
        tm = max(8, _round_up(tm // 2, 8))
    return tm


def _choose_mp_tile(Hp, Mp0, row_tile, lane, wbytes, obytes, vmem_budget):
    """Largest mlp_dim tile whose working set fits the VMEM budget."""
    # Per-step VMEM independent of the mlp tile:
    #   x tile (2 bufs, bf16) + out tile (2 bufs) + f32 accumulator scratch.
    fixed = 2 * row_tile * Hp * wbytes + 2 * row_tile * Hp * obytes + row_tile * Hp * 4

    def need(t, nbuf):
        # w1 (Hp, t) + w2 (t, Hp) blocks (+ tiny biases) + f32 (tm, t) intermediate.
        return fixed + nbuf * 2 * Hp * t * wbytes + row_tile * t * 4

    if need(Mp0, 1) <= vmem_budget:
        return Mp0, Mp0  # whole mlp_dim resident, single-buffered weights
    t = Mp0
    while t > lane and need(t, 2) > vmem_budget:
        t = _round_up(t // 2, lane)
    t = max(lane, t)
    k = pl.cdiv(Mp0, t)
    t = _round_up(pl.cdiv(Mp0, k), lane)
    return t, k * t  # (tile, padded mlp_dim)


# ---------------------------------------------------------------------------
# One-time parameter preparation (transpose + pad + cast, done once per model)
# ---------------------------------------------------------------------------
def prepare_mlp_params(fc1_w, fc1_b, fc2_w, fc2_b, *,
                       compute_dtype=jnp.bfloat16, config=None):
    """fc1_w: (mlp_dim, hidden), fc2_w: (hidden, mlp_dim)  (PyTorch (out, in))."""
    cfg = dict(_device_config() if config is None else config)
    mlp_dim, hidden = fc1_w.shape
    lane = cfg["lane"]
    Hp = _lane_pad(hidden, lane)
    Mp0 = _lane_pad(mlp_dim, lane)
    wbytes = jnp.dtype(compute_dtype).itemsize
    mp_tile, Mp = _choose_mp_tile(Hp, Mp0, cfg["row_tile"], lane, wbytes, 4,
                                  cfg["vmem_budget"])

    # Zero padding is exact: padded columns/rows contribute 0 and LeakyReLU(0)=0.
    w1 = jnp.pad(jnp.transpose(fc1_w), ((0, Hp - hidden), (0, Mp - mlp_dim)))  # (Hp, Mp)
    w2 = jnp.pad(jnp.transpose(fc2_w), ((0, Mp - mlp_dim), (0, Hp - hidden)))  # (Mp, Hp)
    b1 = jnp.pad(fc1_b, (0, Mp - mlp_dim)).reshape(1, Mp)
    b2 = jnp.pad(fc2_b, (0, Hp - hidden)).reshape(1, Hp)

    return dict(
        w1=w1.astype(compute_dtype), b1=b1.astype(jnp.float32),   # biases stay f32
        w2=w2.astype(compute_dtype), b2=b2.astype(jnp.float32),
        hidden=hidden, mlp_dim=mlp_dim, Hp=Hp, Mp=Mp, mp_tile=mp_tile,
        compute_dtype=compute_dtype, cfg=cfg,
    )


# ---------------------------------------------------------------------------
# Kernels
# ---------------------------------------------------------------------------
def _mlp_kernel_fused(x_ref, w1_ref, b1_ref, w2_ref, b2_ref, o_ref):
    """Whole mlp_dim resident: fc1 + bias + LeakyReLU(0.2) + fc2 + bias."""
    h = jnp.dot(x_ref[...], w1_ref[...], preferred_element_type=jnp.float32)
    h = h + b1_ref[...]
    h = jnp.maximum(h, 0.2 * h)                      # LeakyReLU(0.2), exact, f32
    # TODO(synk): training-mode Dropout(0.1) omitted (eval semantics / identity);
    # could be added in-kernel via pltpu.prng_seed + pltpu.prng_random_bits.
    o = jnp.dot(h.astype(w2_ref.dtype), w2_ref[...],
                preferred_element_type=jnp.float32)
    o_ref[...] = (o + b2_ref[...]).astype(o_ref.dtype)


def _mlp_kernel_tiled(x_ref, w1_ref, b1_ref, w2_ref, b2_ref, o_ref, acc_ref):
    """mlp_dim tiled over grid axis 1; f32 (tm, Hp) accumulator for fc2."""
    j = pl.program_id(1)

    @pl.when(j == 0)
    def _():
        acc_ref[...] = jnp.zeros_like(acc_ref)

    h = jnp.dot(x_ref[...], w1_ref[...], preferred_element_type=jnp.float32)
    h = h + b1_ref[...]
    h = jnp.maximum(h, 0.2 * h)
    acc_ref[...] += jnp.dot(h.astype(w2_ref.dtype), w2_ref[...],
                            preferred_element_type=jnp.float32)

    @pl.when(j == pl.num_programs(1) - 1)
    def _():
        o_ref[...] = (acc_ref[...] + b2_ref[...]).astype(o_ref.dtype)


# ---------------------------------------------------------------------------
# Forward wrapper
# ---------------------------------------------------------------------------
def mlp_forward(x, prepared, *, out_dtype=None):
    """JAX/Pallas equivalent of Mlp.forward (dropout disabled / eval mode)."""
    B, S, hidden = x.shape
    assert hidden == prepared["hidden"], "hidden size mismatch with prepared params"
    cfg = prepared["cfg"]
    Hp, Mp, tMp = prepared["Hp"], prepared["Mp"], prepared["mp_tile"]
    compute_dtype = prepared["compute_dtype"]
    out_dtype = x.dtype if out_dtype is None else out_dtype

    N = B * S
    tm = _choose_row_tile(N, cfg["row_tile"], cfg["min_row_steps"])
    Np = _round_up(N, tm)
    kt = Mp // tMp

    x2 = x.reshape(N, hidden).astype(compute_dtype)
    x_p = jnp.pad(x2, ((0, Np - N), (0, Hp - hidden)))

    # Constant-index blocks (never change across the grid) -> single VMEM buffer.
    const = _single_buffered_spec
    w_spec = const if kt == 1 else pl.BlockSpec

    in_specs = [
        pl.BlockSpec((tm, Hp), lambda i, j: (i, 0)),   # activations: row-tiled
        w_spec((Hp, tMp), lambda i, j: (0, j)),        # fc1 weight block
        w_spec((1, tMp), lambda i, j: (0, j)),         # fc1 bias block (f32)
        w_spec((tMp, Hp), lambda i, j: (j, 0)),        # fc2 weight block
        const((1, Hp), lambda i, j: (0, 0)),           # fc2 bias (f32, always constant)
    ]
    out_spec = pl.BlockSpec((tm, Hp), lambda i, j: (i, 0))

    kernel = _mlp_kernel_fused if kt == 1 else _mlp_kernel_tiled
    scratch = [] if kt == 1 else [pltpu.VMEM((tm, Hp), jnp.float32)]

    flops = 4 * N * prepared["hidden"] * prepared["mlp_dim"]
    bytes_accessed = (
        x_p.size * x_p.dtype.itemsize
        + Np * Hp * jnp.dtype(out_dtype).itemsize
        + prepared["w1"].size * prepared["w1"].dtype.itemsize
        + prepared["w2"].size * prepared["w2"].dtype.itemsize
    )

    out_p = pl.pallas_call(
        kernel,
        out_shape=jax.ShapeDtypeStruct((Np, Hp), out_dtype),
        grid_spec=pltpu.PrefetchScalarGridSpec(
            num_scalar_prefetch=0,
            grid=(Np // tm, kt),
            in_specs=in_specs,
            out_specs=out_spec,
            scratch_shapes=scratch,
        ),
        compiler_params=pltpu.CompilerParams(
            dimension_semantics=("parallel", "arbitrary"),
            vmem_limit_bytes=cfg["vmem_limit"],
        ),
        cost_estimate=pl.CostEstimate(
            flops=int(flops), transcendentals=0, bytes_accessed=int(bytes_accessed)),
    )(x_p, prepared["w1"], prepared["b1"], prepared["w2"], prepared["b2"])

    return out_p[:N, :hidden].reshape(B, S, hidden)


# ---------------------------------------------------------------------------
# Pure-JAX reference (mirrors the PyTorch forward, eval mode, f32)
# ---------------------------------------------------------------------------
def _reference(x, fc1_w, fc1_b, fc2_w, fc2_b):
    h = jnp.einsum("bsh,mh->bsm", x, fc1_w) + fc1_b
    h = jnp.where(h >= 0.0, h, 0.2 * h)
    return jnp.einsum("bsm,hm->bsh", h, fc2_w) + fc2_b


if __name__ == "__main__":
    # Small, module-consistent config: hidden_size=32, mlp_dim=64, seq=8, batch=2.
    B, S = 2, 8
    hidden_size = 32
    mlp_dim = 64

    key = jax.random.PRNGKey(0)
    k_x, k_w1, k_w2, k_b1, k_b2 = jax.random.split(key, 5)

    x = jax.random.normal(k_x, (B, S, hidden_size), dtype=jnp.float32)

    # Match the module's init: xavier_uniform_ weights, normal(std=1e-6) biases.
    bound1 = float(np.sqrt(6.0 / (hidden_size + mlp_dim)))
    bound2 = float(np.sqrt(6.0 / (mlp_dim + hidden_size)))
    fc1_w = jax.random.uniform(k_w1, (mlp_dim, hidden_size),
                               minval=-bound1, maxval=bound1, dtype=jnp.float32)
    fc1_b = 1e-6 * jax.random.normal(k_b1, (mlp_dim,), dtype=jnp.float32)
    fc2_w = jax.random.uniform(k_w2, (hidden_size, mlp_dim),
                               minval=-bound2, maxval=bound2, dtype=jnp.float32)
    fc2_b = 1e-6 * jax.random.normal(k_b2, (hidden_size,), dtype=jnp.float32)

    # One-time weight preparation (transpose + pad + bf16 cast), reused per call.
    prepared = prepare_mlp_params(fc1_w, fc1_b, fc2_w, fc2_b)

    out = jax.block_until_ready(mlp_forward(x, prepared))
    ref = jax.block_until_ready(_reference(x, fc1_w, fc1_b, fc2_w, fc2_b))

    assert out.shape == (B, S, hidden_size)
    # bf16 MXU operands (f32 accumulation) vs. f32 reference -> loosened tolerance.
    np.testing.assert_allclose(np.asarray(out), np.asarray(ref), rtol=3e-2, atol=3e-2)

    print("KERNEL_OK")
</pallas_src>

<mosaic_0001>
module attributes {stable_mosaic.version = 11 : i64} {
  func.func @_mlp_kernel_fused(%arg0: i32, %arg1: i32, %arg2: memref<16x128xbf16, #tpu.memory_space<vmem>>, %arg3: memref<128x128xbf16, #tpu.memory_space<vmem>>, %arg4: memref<1x128xf32, #tpu.memory_space<vmem>>, %arg5: memref<128x128xbf16, #tpu.memory_space<vmem>>, %arg6: memref<1x128xf32, #tpu.memory_space<vmem>>, %arg7: memref<16x128xf32, #tpu.memory_space<vmem>>) attributes {dimension_semantics = [#tpu.dimension_semantics<parallel>, #tpu.dimension_semantics<arbitrary>], iteration_bounds = array<i64: 1, 1>, scalar_prefetch = 0 : i64, scratch_operands = 0 : i64, tpu.core_type = #tpu.core_type<tc>, window_params = [{transform_indices = @transform_0, window_bounds = array<i64: 16, 128>}, {pipeline_mode = #tpu.pipeline_mode<synchronous>, transform_indices = @transform_1, window_bounds = array<i64: 128, 128>}, {pipeline_mode = #tpu.pipeline_mode<synchronous>, transform_indices = @transform_2, window_bounds = array<i64: 1, 128>}, {pipeline_mode = #tpu.pipeline_mode<synchronous>, transform_indices = @transform_3, window_bounds = array<i64: 128, 128>}, {pipeline_mode = #tpu.pipeline_mode<synchronous>, transform_indices = @transform_4, window_bounds = array<i64: 1, 128>}, {transform_indices = @transform_5, window_bounds = array<i64: 16, 128>}]} {
    %c0 = arith.constant 0 : index
    %c0_0 = arith.constant 0 : index
    %0 = vector.load %arg2[%c0, %c0_0] : memref<16x128xbf16, #tpu.memory_space<vmem>>, vector<16x128xbf16>
    %c0_1 = arith.constant 0 : index
    %c0_2 = arith.constant 0 : index
    %1 = vector.load %arg3[%c0_1, %c0_2] : memref<128x128xbf16, #tpu.memory_space<vmem>>, vector<128x128xbf16>
    %cst = arith.constant dense<0.000000e+00> : vector<16x128xf32>
    %2 = tpu.matmul %0, %1, %cst {dimension_numbers = #tpu.dot_dimension_numbers<[1], [0], [0], [1], [0, 0, 1, 1], [], []>} : vector<16x128xbf16>, vector<128x128xbf16>, vector<16x128xf32> -> vector<16x128xf32>
    %c0_3 = arith.constant 0 : index
    %c0_4 = arith.constant 0 : index
    %3 = vector.load %arg4[%c0_3, %c0_4] : memref<1x128xf32, #tpu.memory_space<vmem>>, vector<1x128xf32>
    %4 = vector.broadcast %3 : vector<1x128xf32> to vector<16x128xf32>
    %5 = arith.addf %2, %4 : vector<16x128xf32>
    %cst_5 = arith.constant 2.000000e-01 : f32
    %6 = vector.broadcast %cst_5 : f32 to vector<16x128xf32>
    %7 = arith.mulf %6, %5 : vector<16x128xf32>
    %8 = arith.maximumf %5, %7 : vector<16x128xf32>
    %9 = arith.truncf %8 : vector<16x128xf32> to vector<16x128xbf16>
    %c0_6 = arith.constant 0 : index
    %c0_7 = arith.constant 0 : index
    %10 = vector.load %arg5[%c0_6, %c0_7] : memref<128x128xbf16, #tpu.memory_space<vmem>>, vector<128x128xbf16>
    %cst_8 = arith.constant dense<0.000000e+00> : vector<16x128xf32>
    %11 = tpu.matmul %9, %10, %cst_8 {dimension_numbers = #tpu.dot_dimension_numbers<[1], [0], [0], [1], [0, 0, 1, 1], [], []>} : vector<16x128xbf16>, vector<128x128xbf16>, vector<16x128xf32> -> vector<16x128xf32>
    %c0_9 = arith.constant 0 : index
    %c0_10 = arith.constant 0 : index
    %12 = vector.load %arg6[%c0_9, %c0_10] : memref<1x128xf32, #tpu.memory_space<vmem>>, vector<1x128xf32>
    %13 = vector.broadcast %12 : vector<1x128xf32> to vector<16x128xf32>
    %14 = arith.addf %11, %13 : vector<16x128xf32>
    %c0_11 = arith.constant 0 : index
    %c0_12 = arith.constant 0 : index
    %15 = vector.load %arg7[%c0_11, %c0_12] : memref<16x128xf32, #tpu.memory_space<vmem>>, vector<16x128xf32>
    tpu.vector_store %arg7[%c0_11, %c0_12], %14 {strides = array<i32>} : memref<16x128xf32, #tpu.memory_space<vmem>>, vector<16x128xf32>,
    return
  }
  func.func @transform_0(%arg0: i32, %arg1: i32) -> (i32, i32) {
    %c0_i32 = arith.constant 0 : i32
    %c0_i32_0 = arith.constant 0 : i32
    return %arg0, %c0_i32 : i32, i32
  }
  func.func @transform_1(%arg0: i32, %arg1: i32) -> (i32, i32) {
    %c0_i32 = arith.constant 0 : i32
    %c0_i32_0 = arith.constant 0 : i32
    return %c0_i32, %arg1 : i32, i32
  }
  func.func @transform_2(%arg0: i32, %arg1: i32) -> (i32, i32) {
    %c0_i32 = arith.constant 0 : i32
    %c0_i32_0 = arith.constant 0 : i32
    return %c0_i32, %arg1 : i32, i32
  }
  func.func @transform_3(%arg0: i32, %arg1: i32) -> (i32, i32) {
    %c0_i32 = arith.constant 0 : i32
    %c0_i32_0 = arith.constant 0 : i32
    return %arg1, %c0_i32 : i32, i32
  }
  func.func @transform_4(%arg0: i32, %arg1: i32) -> (i32, i32) {
    %c0_i32 = arith.constant 0 : i32
    %c0_i32_0 = arith.constant 0 : i32
    %c0_i32_1 = arith.constant 0 : i32
    return %c0_i32, %c0_i32_0 : i32, i32
  }
  func.func @transform_5(%arg0: i32, %arg1: i32) -> (i32, i32) {
    %c0_i32 = arith.constant 0 : i32
    %c0_i32_0 = arith.constant 0 : i32
    return %arg0, %c0_i32 : i32, i32
  }
}

</mosaic_0001>

<bundles_post_ra>
// kernel: tpu_custom_call.1
= control target key start
LH: loop header
LB: loop body
LE: loop exit
PB: predicated region body
PF: predicated region fallthrough
CT: control target
= control target key end

     0   :  { %10 = vsyncpa [#allocation3], 0  ;;  %s720_s0 = inlined_call_operand.hbm [shape: bf16[16,128], index: 0, kind: input, shape index: {}]   ;;  %s721_s1 = inlined_call_operand.hbm [shape: bf16[128,128], index: 1, kind: input, shape index: {}]   ;;  %s722_s2 = inlined_call_operand.hbm [shape: f32[1,128], index: 2, kind: input, shape index: {}]   ;;  %s723_s3 = inlined_call_operand.hbm [shape: bf16[128,128], index: 3, kind: input, shape index: {}]   ;;  %s724_s4 = inlined_call_operand.hbm [shape: f32[1,128], index: 4, kind: input, shape index: {}]   ;;  %s725_s5 = inlined_call_operand.hbm [shape: f32[16,128], index: 5, kind: output, shape index: {}]  }
   0x1   :  { %11 = vsyncpa [#allocation6], 0 }
   0x2   :  { %12 = vsyncpa [#allocation9], 0 }
   0x3   :  { %13 = vsyncpa [#allocation4], 0  ;;  %s590_s18 = smov [#allocation5]   ;;  %s591_s20 = smov [#allocation8]  }
   0x4   :  { %s31_s19 = sshll.u32 %s590_s18, 4  ;;  %s53_s21 = sshll.u32 %s591_s20, 4  ;;  %s32_s19 = int_to_ptr.vmem [resolvable:$true] %s31_s19  ;;  %s632_s21 = int_to_ptr.vmem [resolvable:$true] %s53_s21 }
   0x5   :  { %s450_s24 = scalar_lea.hbm %s721_s1, 1024 }
   0x6   :  { %p451_p0 = scmp.ne.s32.totalorder %s721_s1, %s450_s24  ;;  %p454_p1 = scmp.lt.u32.totalorder %s450_s24, %s721_s1 }
   0x8   :  { %p456_p2 = pnand %p454_p1, %p451_p0 }
   0xa   :  { %459 = shalt.err (!%p456_p2)
}
   0xb   :  { %s460_s29 = scalar_lea.vmem %s32_s19, 1024  ;;  %p465_p4 = scmp.lt.s32.totalorder %s32_s19, %s32_s19 }
   0xc   :  { %p461_p3 = scmp.ne.s32.totalorder %s32_s19, %s460_s29  ;;  %p466_p5 = scmp.lt.s32.totalorder %s460_s29, %s460_s29 }
   0xe   :  { %p467_p6 = por %p466_p5, %p465_p4 }
  0x10   :  { %p468_p7 = pnand %p467_p6, %p461_p3 }
  0x12   :  { %471 = shalt.err (!%p468_p7)
}
  0x13   :  { %s592_s30 = smov 64   ;;  %s593_s6 = smov 4  }
  0x14   :  { %37 = dma.hbm_to_vmem [thread:$0]  %s721_s1, 1024, %s32_s19, [#allocation6], %s592_s30, %s592_s30, %s593_s6  }
  0x15   :  { %s472_s11 = scalar_lea.hbm %s723_s3, 1024 }
  0x16   :  { %p473_p8 = scmp.ne.s32.totalorder %s723_s3, %s472_s11  ;;  %p476_p9 = scmp.lt.u32.totalorder %s472_s11, %s723_s3 }
  0x18   :  { %p478_p10 = pnand %p476_p9, %p473_p8 }
  0x1a   :  { %481 = shalt.err (!%p478_p10)
}
  0x1b   :  { %s482_s16 = scalar_lea.vmem %s632_s21, 1024  ;;  %p487_p12 = scmp.lt.s32.totalorder %s632_s21, %s632_s21 }
  0x1c   :  { %p483_p11 = scmp.ne.s32.totalorder %s632_s21, %s482_s16  ;;  %p488_p13 = scmp.lt.s32.totalorder %s482_s16, %s482_s16 }
  0x1e   :  { %p489_p0 = por %p488_p13, %p487_p12 }
  0x20   :  { %p490_p1 = pnand %p489_p0, %p483_p11 }
  0x22   :  { %493 = shalt.err (!%p490_p1)
}
  0x23   :  { %59 = dma.hbm_to_vmem [thread:$0]  %s723_s3, 1024, %s632_s21, [#allocation9], %s592_s30, %s592_s30, %s593_s6  }
  0x24   :  { %s594_s18 = smov [#allocation2]   ;;  %s595_s20 = smov [#allocation7]  }
  0x25   :  { %s19_s19 = sshll.u32 %s594_s18, 4  ;;  %s44_s22 = sshll.u32 %s595_s20, 4  ;;  %s20_s19 = int_to_ptr.vmem [resolvable:$true] %s19_s19  ;;  %s45_s22 = int_to_ptr.vmem [resolvable:$true] %s44_s22 }
  0x26   :  { %s494_s25 = scalar_lea.hbm %s720_s0, 128 }
  0x27   :  { %p495_p2 = scmp.ne.s32.totalorder %s720_s0, %s494_s25  ;;  %p498_p3 = scmp.lt.u32.totalorder %s494_s25, %s720_s0 }
  0x29   :  { %p500_p4 = pnand %p498_p3, %p495_p2 }
  0x2b   :  { %503 = shalt.err (!%p500_p4)
}
  0x2c   :  { %s504_s3 = scalar_lea.vmem %s20_s19, 128  ;;  %p509_p6 = scmp.lt.s32.totalorder %s20_s19, %s20_s19 }
  0x2d   :  { %p505_p5 = scmp.ne.s32.totalorder %s20_s19, %s504_s3  ;;  %p510_p7 = scmp.lt.s32.totalorder %s504_s3, %s504_s3 }
  0x2f   :  { %p511_p8 = por %p510_p7, %p509_p6 }
  0x31   :  { %p512_p9 = pnand %p511_p8, %p505_p5 }
  0x33   :  { %515 = shalt.err (!%p512_p9)
}
  0x34   :  { %25 = dma.hbm_to_vmem [thread:$0]  %s720_s0, 128, %s20_s19, [#allocation3], %s592_s30, %s592_s30, %s593_s6  }
  0x35   :  { %s516_s10 = scalar_lea.hbm %s722_s2, 16 }
  0x36   :  { %p517_p10 = scmp.ne.s32.totalorder %s722_s2, %s516_s10  ;;  %p520_p11 = scmp.lt.u32.totalorder %s516_s10, %s722_s2 }
  0x38   :  { %p522_p12 = pnand %p520_p11, %p517_p10 }
  0x3a   :  { %525 = shalt.err (!%p522_p12)
}
  0x3b   :  { %s526_s15 = scalar_lea.vmem %s45_s22, 16  ;;  %s530_s16 = scalar_lea.vmem %s45_s22, 32 }
  0x3c   :  { %p527_p13 = scmp.ne.s32.totalorder %s45_s22, %s526_s15  ;;  %p531_p0 = scmp.lt.s32.totalorder %s45_s22, %s45_s22 }
  0x3d   :  { %p532_p1 = scmp.lt.s32.totalorder %s530_s16, %s526_s15 }
  0x3f   :  { %p533_p2 = por %p532_p1, %p531_p0 }
  0x41   :  { %p534_p3 = pnand %p533_p2, %p527_p13 }
  0x43   :  { %537 = shalt.err (!%p534_p3)
}
  0x44   :  { %47 = dma.hbm_to_vmem [thread:$0]  %s722_s2, 16, %s45_s22, [#allocation6]  }
  0x45   :  { %s596_s6 = smov [#allocation10]   ;;  %s538_s19 = scalar_lea.hbm %s724_s4, 16 }
  0x46   :  { %s66_s1 = sshll.u32 %s596_s6, 4  ;;  %p539_p4 = scmp.ne.s32.totalorder %s724_s4, %s538_s19  ;;  %s67_s1 = int_to_ptr.vmem [resolvable:$true] %s66_s1 }
  0x47   :  { %p542_p5 = scmp.lt.u32.totalorder %s538_s19, %s724_s4 }
  0x49   :  { %p544_p6 = pnand %p542_p5, %p539_p4 }
  0x4b   :  { %547 = shalt.err (!%p544_p6)
}
  0x4c   :  { %s548_s26 = scalar_lea.vmem %s67_s1, 16  ;;  %s552_s2 = scalar_lea.vmem %s67_s1, 32 }
  0x4d   :  { %p549_p7 = scmp.ne.s32.totalorder %s67_s1, %s548_s26  ;;  %p553_p8 = scmp.lt.s32.totalorder %s67_s1, %s67_s1 }
  0x4e   :  { %p554_p9 = scmp.lt.s32.totalorder %s552_s2, %s548_s26 }
  0x50   :  { %p555_p10 = por %p554_p9, %p553_p8 }
  0x52   :  { %p556_p11 = pnand %p555_p10, %p549_p7 }
  0x54   :  { %559 = shalt.err (!%p556_p11)
}
  0x55   :  { %69 = dma.hbm_to_vmem [thread:$0]  %s724_s4, 16, %s67_s1, [#allocation9]  }
  0x56   :  { %582 = dma.done.wait [#allocation3], 128  }
  0x57   :  { %583 = vsyncadd [#allocation3], 4294967168 }
  0x58   :  { %584 = dma.done.wait [#allocation6], 1040  }
  0x59   :  { %585 = vsyncadd [#allocation6], 4294966256 }
  0x5a   :  { %586 = dma.done.wait [#allocation9], 1040  }
  0x5b   :  { %587 = vsyncadd [#allocation9], 4294966256  ;;  %v597_v0 = vmov 0.0   ;;  %vm598_vm0 = vmmov 0   ;;  %v433_v1 = vld [vmem:[#allocation5] sm:$0xff]   ;;  %v434_v2 = vld [vmem:[#allocation5 + $0x8] sm:$0xff]  }
  0x5c   :  { %381 = vmatprep.subr.bf16.mxu0 %v597_v0  ;;  %397 = vmatprep.mubr.msk.bf16.mxu0 %vm598_vm0, %v597_v0  ;;  %v435_v3 = vld [vmem:[#allocation5 + $0x10] sm:$0xff]   ;;  %v442_v4 = vld [vmem:[#allocation8] sm:$0xff]   ;;  %v436_v5 = vld [vmem:[#allocation5 + $0x18] sm:$0xff]   ;;  %s599_s4 = smov [#allocation11]  }
  0x5d   :  { %401 = vmatprep.subr.bf16.mxu1 %v597_v0  ;;  %417 = vmatprep.mubr.msk.bf16.mxu1 %vm598_vm0, %v597_v0  ;;  %v443_v6 = vld [vmem:[#allocation8 + $0x8] sm:$0xff]   ;;  %v437_v7 = vld [vmem:[#allocation5 + $0x20] sm:$0xff]   ;;  %v444_v8 = vld [vmem:[#allocation8 + $0x10] sm:$0xff]   ;;  %s330_s28 = sshll.u32 %s599_s4, 4  ;;  %s331_s28 = int_to_ptr.vmem [resolvable:$true] %s330_s28 }
  0x5e   :  { %382 = vmatpush3.bf16.msra.mxu0 %v433_v1  ;;  %402 = vmatpush3.bf16.msra.mxu1 %v442_v4  ;;  %v438_v9 = vld [vmem:[#allocation5 + $0x28] sm:$0xff]   ;;  %v445_v10 = vld [vmem:[#allocation8 + $0x18] sm:$0xff]   ;;  %v439_v11 = vld [vmem:[#allocation5 + $0x30] sm:$0xff]   ;;  %s560_s29 = scalar_lea.vmem %s331_s28, 256  ;;  %p565_p13 = scmp.lt.s32.totalorder %s331_s28, %s331_s28 }
  0x5f   :  { %383 = vmatprep.subr.bf16.mxu0 %v597_v0  ;;  %403 = vmatprep.subr.bf16.mxu1 %v597_v0  ;;  %v446_v12 = vld [vmem:[#allocation8 + $0x20] sm:$0xff]   ;;  %v440_v13 = vld [vmem:[#allocation5 + $0x38] sm:$0xff]   ;;  %v447_v15 = vld [vmem:[#allocation8 + $0x28] sm:$0xff]   ;;  %p561_p12 = scmp.ne.s32.totalorder %s331_s28, %s560_s29  ;;  %p566_p0 = scmp.lt.s32.totalorder %s560_s29, %s560_s29 }
  0x60   :  { %v441_v14 = vld [vmem:[#allocation2] sm:$0xff]   ;;  %v344_v18 = vld [vmem:[#allocation7] ss:$0 sm:$0xff]  ;;  %v354_v30 = vld [vmem:[#allocation10] ss:$0 sm:$0xff] }
  0x61   :  { %v448_v16 = vld [vmem:[#allocation8 + $0x30] sm:$0xff]   ;;  %v449_v17 = vld [vmem:[#allocation8 + $0x38] sm:$0xff]   ;;  %p567_p1 = por %p566_p0, %p565_p13 }
  0x62   :  { %384 = vmatpush3.bf16.msra.mxu0 %v434_v2  ;;  %404 = vmatpush3.bf16.msra.mxu1 %v443_v6 }
  0x63   :  { %385 = vmatprep.subr.bf16.mxu0 %v597_v0  ;;  %405 = vmatprep.subr.bf16.mxu1 %v597_v0  ;;  %p568_p2 = pnand %p567_p1, %p561_p12 }
  0x66   :  { %386 = vmatpush3.bf16.msra.mxu0 %v435_v3  ;;  %406 = vmatpush3.bf16.msra.mxu1 %v444_v8 }
  0x67   :  { %387 = vmatprep.subr.bf16.mxu0 %v597_v0  ;;  %407 = vmatprep.subr.bf16.mxu1 %v597_v0 }
  0x6a   :  { %388 = vmatpush3.bf16.msra.mxu0 %v436_v5  ;;  %408 = vmatpush3.bf16.msra.mxu1 %v445_v10 }
  0x6b   :  { %389 = vmatprep.subr.bf16.mxu0 %v597_v0  ;;  %409 = vmatprep.subr.bf16.mxu1 %v597_v0 }
  0x6e   :  { %390 = vmatpush3.bf16.msra.mxu0 %v437_v7  ;;  %410 = vmatpush3.bf16.msra.mxu1 %v446_v12 }
  0x6f   :  { %391 = vmatprep.subr.bf16.mxu0 %v597_v0  ;;  %411 = vmatprep.subr.bf16.mxu1 %v597_v0 }
  0x72   :  { %392 = vmatpush3.bf16.msra.mxu0 %v438_v9  ;;  %412 = vmatpush3.bf16.msra.mxu1 %v447_v15 }
  0x73   :  { %393 = vmatprep.subr.bf16.mxu0 %v597_v0  ;;  %413 = vmatprep.subr.bf16.mxu1 %v597_v0 }
  0x76   :  { %394 = vmatpush3.bf16.msra.mxu0 %v439_v11  ;;  %414 = vmatpush3.bf16.msra.mxu1 %v448_v16 }
  0x77   :  { %395 = vmatprep.subr.bf16.mxu0 %v597_v0  ;;  %415 = vmatprep.subr.bf16.mxu1 %v597_v0 }
  0x7a   :  { %396 = vmatpush3.bf16.msra.mxu0 %v440_v13  ;;  %416 = vmatpush3.bf16.msra.mxu1 %v449_v17 }
  0x7d   :  { %398 = vmatmul.mubr.bf16.vlgmr.msra.gmra.mrb[0].mxu0 %v441_v14 }
 0x150   :  { %v199_v19 = vpop.f32.mrb[0].mxu0 }
 0x151   :  { %v200_v20 = vadd.f32 %v344_v18, %v199_v19  ;;  %v399_v21 = vpop.f32.mrb[1].mxu0 }
 0x152   :  { %v202_v22 = vpop.f32.mrb[2].mxu0 }
 0x153   :  { %v206_v23 = vmul.f32 0.2, %v200_v20  ;;  %v203_v24 = vadd.f32 %v344_v18, %v202_v22  ;;  %v400_v25 = vpop.f32.mrb[3].mxu0 }
 0x155   :  { %v207_v26 = vmul.f32 0.2, %v203_v24  ;;  %v208_v27 = vmax.f32 %v200_v20, %v206_v23 }
 0x157   :  { %v209_v28 = vmax.f32 %v203_v24, %v207_v26 }
 0x159   :  { %v210_v29 = vpack.c.bf16 %v209_v28, %v208_v27 }
 0x15b   :  { %418 = vmatmul.mubr.bf16.vlgmr.msra.gmra.mrb[0].mxu1 %v210_v29 }
 0x22e   :  { %v316_v31 = vpop.f32.mrb[0].mxu1 }
 0x22f   :  { %v317_v32 = vadd.f32 %v354_v30, %v316_v31  ;;  %v419_v33 = vpop.f32.mrb[1].mxu1 }
 0x230   :  { %v319_v34 = vpop.f32.mrb[2].mxu1 }
 0x231   :  { %323 = vst [vmem:[#allocation11] sm:$0xff] %v317_v32  ;;  %v320_v35 = vadd.f32 %v354_v30, %v319_v34  ;;  %v420_v36 = vpop.f32.mrb[3].mxu1 }
 0x233   :  { %324 = vst [vmem:[#allocation11 + $0x8] sm:$0xff] %v320_v35 }
 0x234   :  { %571 = shalt.err (!%p568_p2)
}
 0x235   :  { %s572_s7 = scalar_lea.hbm %s725_s5, 256 }
 0x236   :  { %p573_p3 = scmp.ne.s32.totalorder %s725_s5, %s572_s7  ;;  %p576_p4 = scmp.lt.u32.totalorder %s572_s7, %s725_s5 }
 0x238   :  { %p578_p5 = pnand %p576_p4, %p573_p3 }
 0x23a   :  { %581 = shalt.err (!%p578_p5)
}
 0x23b   :  { %s600_s12 = smov 128   ;;  %s601_s13 = smov 8  }
 0x23c   :  { %336 = dma.vmem_to_hbm [thread:$0]  %s331_s28, 256, %s725_s5, [#allocation4], %s600_s12, %s600_s12, %s601_s13  }
 0x23d   :  { %588 = dma.done.wait [#allocation4], 256  }
 0x23e   :  { %589 = vsyncadd [#allocation4], 4294967040 }
 0x23f   :  { %340 = vsyncpa [#allocation3], 1 }
 0x240   :  { %341 = vsyncpa [#allocation6], 1 }
 0x241   :  { %342 = vsyncpa [#allocation9], 1 }
 0x242   :  { %343 = vsyncpa [#allocation4], 1 }

</bundles_post_ra>
